<compile_context>
chip_gen: v7x
topology: tpu7x:2x2x1
jax: 0.10.0
libtpu: 0.0.40
codegen_flags: <defaults>
</compile_context>

<pallas_src>
import numpy as np
import jax
import jax.numpy as jnp
from jax.experimental import pallas as pl
from jax.experimental.pallas import tpu as pltpu

GAMMA = 10.0
NUM_CENTERS = 20                 # len(np.arange(0, 2, 0.1))
EMBED_DIM = 32                   # chosen embed_dim for the demo
PACK = 128 // EMBED_DIM          # bonds packed per 128-lane output row (= 4)
K_PACKED = PACK * NUM_CENTERS    # 80 RBF lanes per packed row
LANES = PACK * EMBED_DIM         # 128 output lanes per packed row
TILE_ROWS = 8192                 # packed rows per grid step (= 32768 bonds); multiple of 8

assert 128 % EMBED_DIM == 0, "packing trick assumes embed_dim divides 128"


def bond_float_rbf_kernel(x_ref, s_ref, c_ref, w_ref, b_ref, o_ref):
    # x_ref: (R, 4)    bond values, 4 bonds per packed row
    # s_ref: (4, 80)   selector kron(I4, ones(1,20)) -- broadcasts each bond over its 20 RBF lanes
    # c_ref: (1, 80)   centers tiled 4x
    # w_ref: (80, 128) block-diagonal weight kron(I4, W^T)
    # b_ref: (1, 128)  bias tiled 4x
    # o_ref: (R, 128)  lane-dense packed output: row r, lane 32*j+e = feature e of bond 4r+j
    hi = jax.lax.Precision.HIGHEST
    xb = jnp.dot(x_ref[...], s_ref[...], precision=hi,
                 preferred_element_type=jnp.float32)            # (R, 80): x value per RBF lane
    diff = xb - c_ref[...]                                       # (R, 80)
    rbf = jnp.exp(-GAMMA * diff * diff)                          # (R, 80): lane-dense EUP exp
    out = jnp.dot(rbf, w_ref[...], precision=hi,
                  preferred_element_type=jnp.float32)            # (R, 128) on MXU
    o_ref[...] = out + b_ref[...]                                # bias broadcast over rows


def _grid_semantics():
    # CORE_PARALLEL only helps (and is only needed) on 2-TensorCore chips (v7x);
    # harmless plain "parallel" elsewhere.
    try:
        kind = jax.devices()[0].device_kind.lower()
    except Exception:
        kind = ""
    if "v7" in kind or "7x" in kind:
        return (pltpu.CORE_PARALLEL,)
    return (pltpu.PARALLEL,)


def bond_float_rbf(bond_float_features, weight, bias, centers, *, tile_rows=TILE_ROWS):
    """bond_float_features: any shape (flattened to N); weight: (E, C) torch layout;
    bias: (E,); centers: (C,).  Returns (N, E) float32, matching the PyTorch module."""
    x = jnp.asarray(bond_float_features, jnp.float32).reshape(-1)
    n = x.shape[0]

    # Pack 4 bonds per row (pad by at most 3 elements).
    n4 = ((n + PACK - 1) // PACK) * PACK
    if n4 != n:
        x = jnp.pad(x, (0, n4 - n))
    n_rows = n4 // PACK
    x_rows = x.reshape(n_rows, PACK)                              # (n_rows, 4)

    # Row tile: multiple of 8 sublanes; partial boundary block handled by Pallas masking,
    # so the output array is exactly (n_rows, 128) and no post-kernel slice/copy is needed
    # when n is a multiple of 4.
    if n_rows >= 8:
        tile_r = min(tile_rows, (n_rows // 8) * 8)
    else:
        tile_r = n_rows
    grid = (pl.cdiv(n_rows, tile_r),)

    # Constant operands (tiny; constant-folded under jit).
    eye = jnp.eye(PACK, dtype=jnp.float32)
    sel = jnp.kron(eye, jnp.ones((1, NUM_CENTERS), jnp.float32))          # (4, 80)
    cb = jnp.tile(jnp.asarray(centers, jnp.float32).reshape(1, -1), (1, PACK))  # (1, 80)
    wb = jnp.kron(eye, jnp.asarray(weight, jnp.float32).T)                # (80, 128)
    bb = jnp.tile(jnp.asarray(bias, jnp.float32).reshape(1, -1), (1, PACK))     # (1, 128)

    out_packed = pl.pallas_call(
        bond_float_rbf_kernel,
        out_shape=jax.ShapeDtypeStruct((n_rows, LANES), jnp.float32),
        grid_spec=pltpu.PrefetchScalarGridSpec(
            num_scalar_prefetch=0,
            grid=grid,
            in_specs=[
                pl.BlockSpec((tile_r, PACK), lambda i: (i, 0)),              # x rows
                pl.BlockSpec((PACK, K_PACKED), lambda i: (0, 0)),            # selector (invariant)
                pl.BlockSpec((1, K_PACKED), lambda i: (0, 0)),               # centers (invariant)
                pl.BlockSpec((K_PACKED, LANES), lambda i: (0, 0)),           # weight (invariant)
                pl.BlockSpec((1, LANES), lambda i: (0, 0)),                  # bias (invariant)
            ],
            out_specs=pl.BlockSpec((tile_r, LANES), lambda i: (i, 0)),
        ),
        compiler_params=pltpu.CompilerParams(
            dimension_semantics=_grid_semantics(),
            vmem_limit_bytes=48 * 1024 * 1024,
        ),
    )(x_rows, sel, cb, wb, bb)

    # Free, layout-compatible view back to (N, embed_dim); slice only if N wasn't a multiple of 4.
    out = out_packed.reshape(n4, EMBED_DIM)
    if n4 != n:
        out = out[:n]
    return out


if __name__ == "__main__":
    key = jax.random.PRNGKey(0)
    k_w, k_x = jax.random.split(key)

    # Module init (host-side, mirrors PyTorch): centers, xavier_normal_ Linear weight, zero bias.
    centers = jnp.asarray(np.arange(0, 2, 0.1, dtype=np.float32))          # (20,)
    std = float(np.sqrt(2.0 / (NUM_CENTERS + EMBED_DIM)))
    weight = jax.random.normal(k_w, (EMBED_DIM, NUM_CENTERS), jnp.float32) * std  # (E, C)
    bias = jnp.zeros((EMBED_DIM,), jnp.float32)                            # (E,)

    n_bonds = 200  # small, NOT a multiple of 128 -- exercises the partial boundary block
    bond_float_features = jax.random.uniform(k_x, (n_bonds,), jnp.float32) * 2.0

    fn = jax.jit(lambda v: bond_float_rbf(v, weight, bias, centers))
    out = jax.block_until_ready(fn(bond_float_features))

    # float64 host reference of the PyTorch forward.
    xn = np.asarray(bond_float_features, np.float64)
    cn = np.asarray(centers, np.float64)
    wn = np.asarray(weight, np.float64)
    bn = np.asarray(bias, np.float64)
    ref = np.exp(-GAMMA * (xn[:, None] - cn[None, :]) ** 2) @ wn.T + bn

    np.testing.assert_allclose(np.asarray(out, np.float64), ref, rtol=1e-5, atol=1e-5)
    print("KERNEL_OK")
</pallas_src>

<mosaic_0001>
module attributes {stable_mosaic.version = 11 : i64} {
  func.func @bond_float_rbf_kernel(%arg0: i32, %arg1: memref<48x4xf32, #tpu.memory_space<vmem>>, %arg2: memref<4x80xf32, #tpu.memory_space<vmem>>, %arg3: memref<1x80xf32, #tpu.memory_space<vmem>>, %arg4: memref<80x128xf32, #tpu.memory_space<vmem>>, %arg5: memref<1x128xf32, #tpu.memory_space<vmem>>, %arg6: memref<48x128xf32, #tpu.memory_space<vmem>>) attributes {dimension_semantics = [#tpu.dimension_semantics<parallel>], iteration_bounds = array<i64: 2>, scalar_prefetch = 0 : i64, scratch_operands = 0 : i64, tpu.core_type = #tpu.core_type<tc>, window_params = [{transform_indices = @transform_0, window_bounds = array<i64: 48, 4>}, {pipeline_mode = #tpu.pipeline_mode<synchronous>, transform_indices = @transform_1, window_bounds = array<i64: 4, 80>}, {pipeline_mode = #tpu.pipeline_mode<synchronous>, transform_indices = @transform_2, window_bounds = array<i64: 1, 80>}, {pipeline_mode = #tpu.pipeline_mode<synchronous>, transform_indices = @transform_3, window_bounds = array<i64: 80, 128>}, {pipeline_mode = #tpu.pipeline_mode<synchronous>, transform_indices = @transform_4, window_bounds = array<i64: 1, 128>}, {transform_indices = @transform_5, window_bounds = array<i64: 48, 128>}]} {
    %c0 = arith.constant 0 : index
    %c0_0 = arith.constant 0 : index
    %0 = vector.load %arg1[%c0, %c0_0] : memref<48x4xf32, #tpu.memory_space<vmem>>, vector<48x4xf32>
    %c0_1 = arith.constant 0 : index
    %c0_2 = arith.constant 0 : index
    %1 = vector.load %arg2[%c0_1, %c0_2] : memref<4x80xf32, #tpu.memory_space<vmem>>, vector<4x80xf32>
    %cst = arith.constant dense<0.000000e+00> : vector<48x80xf32>
    %2 = tpu.matmul %0, %1, %cst {dimension_numbers = #tpu.dot_dimension_numbers<[1], [0], [0], [1], [0, 0, 1, 1], [], []>, precision = #tpu.contract_precision<fp32>} : vector<48x4xf32>, vector<4x80xf32>, vector<48x80xf32> -> vector<48x80xf32>
    %c0_3 = arith.constant 0 : index
    %c0_4 = arith.constant 0 : index
    %3 = vector.load %arg3[%c0_3, %c0_4] : memref<1x80xf32, #tpu.memory_space<vmem>>, vector<1x80xf32>
    %4 = vector.broadcast %3 : vector<1x80xf32> to vector<48x80xf32>
    %5 = arith.subf %2, %4 : vector<48x80xf32>
    %cst_5 = arith.constant -1.000000e+01 : f32
    %6 = vector.broadcast %cst_5 : f32 to vector<48x80xf32>
    %7 = arith.mulf %6, %5 : vector<48x80xf32>
    %8 = arith.mulf %7, %5 : vector<48x80xf32>
    %9 = math.exp %8 : vector<48x80xf32>
    %c0_6 = arith.constant 0 : index
    %c0_7 = arith.constant 0 : index
    %10 = vector.load %arg4[%c0_6, %c0_7] : memref<80x128xf32, #tpu.memory_space<vmem>>, vector<80x128xf32>
    %cst_8 = arith.constant dense<0.000000e+00> : vector<48x128xf32>
    %11 = tpu.matmul %9, %10, %cst_8 {dimension_numbers = #tpu.dot_dimension_numbers<[1], [0], [0], [1], [0, 0, 1, 1], [], []>, precision = #tpu.contract_precision<fp32>} : vector<48x80xf32>, vector<80x128xf32>, vector<48x128xf32> -> vector<48x128xf32>
    %c0_9 = arith.constant 0 : index
    %c0_10 = arith.constant 0 : index
    %12 = vector.load %arg5[%c0_9, %c0_10] : memref<1x128xf32, #tpu.memory_space<vmem>>, vector<1x128xf32>
    %13 = vector.broadcast %12 : vector<1x128xf32> to vector<48x128xf32>
    %14 = arith.addf %11, %13 : vector<48x128xf32>
    %c0_11 = arith.constant 0 : index
    %c0_12 = arith.constant 0 : index
    %15 = vector.load %arg6[%c0_11, %c0_12] : memref<48x128xf32, #tpu.memory_space<vmem>>, vector<48x128xf32>
    tpu.vector_store %arg6[%c0_11, %c0_12], %14 {strides = array<i32>} : memref<48x128xf32, #tpu.memory_space<vmem>>, vector<48x128xf32>,
    return
  }
  func.func @transform_0(%arg0: i32) -> (i32, i32) {
    %c0_i32 = arith.constant 0 : i32
    %c0_i32_0 = arith.constant 0 : i32
    return %arg0, %c0_i32 : i32, i32
  }
  func.func @transform_1(%arg0: i32) -> (i32, i32) {
    %c0_i32 = arith.constant 0 : i32
    %c0_i32_0 = arith.constant 0 : i32
    %c0_i32_1 = arith.constant 0 : i32
    return %c0_i32, %c0_i32_0 : i32, i32
  }
  func.func @transform_2(%arg0: i32) -> (i32, i32) {
    %c0_i32 = arith.constant 0 : i32
    %c0_i32_0 = arith.constant 0 : i32
    %c0_i32_1 = arith.constant 0 : i32
    return %c0_i32, %c0_i32_0 : i32, i32
  }
  func.func @transform_3(%arg0: i32) -> (i32, i32) {
    %c0_i32 = arith.constant 0 : i32
    %c0_i32_0 = arith.constant 0 : i32
    %c0_i32_1 = arith.constant 0 : i32
    return %c0_i32, %c0_i32_0 : i32, i32
  }
  func.func @transform_4(%arg0: i32) -> (i32, i32) {
    %c0_i32 = arith.constant 0 : i32
    %c0_i32_0 = arith.constant 0 : i32
    %c0_i32_1 = arith.constant 0 : i32
    return %c0_i32, %c0_i32_0 : i32, i32
  }
  func.func @transform_5(%arg0: i32) -> (i32, i32) {
    %c0_i32 = arith.constant 0 : i32
    %c0_i32_0 = arith.constant 0 : i32
    return %arg0, %c0_i32 : i32, i32
  }
}

</mosaic_0001>

<bundles_post_ra>
// kernel: tile.5
= control target key start
LH: loop header
LB: loop body
LE: loop exit
PB: predicated region body
PF: predicated region fallthrough
CT: control target
= control target key end

     0   :  { %s20_s0 = inlined_call_operand.<no memory space> [shape: f32[], index: 0, kind: input, shape index: {}]   ;;  %s21_s1 = inlined_call_operand.vmem [shape: f32[1,128], index: 1, kind: output, shape index: {}]  }
   0x1   :  { %v2_v0 = vstv %s20_s0 }
   0x2   :  { %3 = vst [vmem:[%s21_s1] sm:$0x1] %v2_v0 }

// kernel: _lambda_.1
= control target key start
LH: loop header
LB: loop body
LE: loop exit
PB: predicated region body
PF: predicated region fallthrough
CT: control target
= control target key end

     0   :  { %s2849_s18 = smov 0   ;;  %s2851_s19 = smov 0   ;;  %s3257_s0 = inlined_call_operand.vmem [shape: f32[50,4], index: 0, kind: input, shape index: {}]   ;;  %s3258_s1 = inlined_call_operand.vmem [shape: f32[4,80], index: 1, kind: input, shape index: {}]   ;;  %s3259_s2 = inlined_call_operand.vmem [shape: f32[1,80], index: 2, kind: input, shape index: {}]   ;;  %s3260_s3 = inlined_call_operand.vmem [shape: f32[80,128], index: 3, kind: input, shape index: {}]   ;;  %s3261_s4 = inlined_call_operand.vmem [shape: f32[1,128], index: 4, kind: input, shape index: {}]   ;;  %s3262_s5 = inlined_call_operand.vmem [shape: f32[50,128], index: 5, kind: output, shape index: {}]  }
   0x1   :  { %s2853_s20 = smov 0  }
   0x2 LB: > { %s2862_s21 = sadd.s32 4294967295, %s2785_s20   ;;  %s2864_s22 = sadd.s32 1, %s2785_s20   ;;  %s2785_s20 = sphi %s2853_s20, %s3269_s20   ;;  %s2781_s19 = sphi %s2851_s19, %s3268_s19   ;;  %s2777_s18 = sphi %s2849_s18, %s3267_s18  }
   0x3   : > { %s129_s23 = ssub.s32 %s2785_s20, %s2864_s22  ;;  %s132_s24 = sadd.s32 1, %s2781_s19 }
   0x4   : > { %p130_p0 = scmp.eq.s32.totalorder %s129_s23, 0  ;;  %p142_p1 = scmp.ne.s32.totalorder %s2781_s19, %s2777_s18 }
   0x5   : > { %p143_p2 = scmp.eq.s32.totalorder %s2862_s21, 1  ;;  %p2034_p3 = scmp.ge.s32.totalorder %s2785_s20, 1 }
   0x6   : > { %s2872_s25 = scalar_select %p130_p0, %s2781_s19, %s132_s24  }
   0x7   : > { %p2874_p4 = por %p143_p2, %p142_p1  ;;  %p196_p5 = scmp.lt.s32.totalorder %s2785_s20, 3 }
   0x9   : > { %p197_p6 = pnand %p2034_p3, %p196_p5 }
   0xa   : > { %v252_v0 = vld [vmem:[%s3258_s1] sm:$0xf] (!%p197_p6)  ;;  %vm272_vm0 = vcmask (!%p197_p6), 1043456   ;;  %s2882_s29 = smul.u32 (!%p197_p6), 6, %s2862_s21  ;;  %vm253_vm1 = vcmask (!%p197_p6), 31744   ;;  %v975_v50 = vld [vmem:[%s3260_s3 + $0x8] sm:$0xff] (!%p197_p6) }
   0xb   : > { %200 = sbr.rel (%p197_p6) target bundleno = 692 (0x2b4), region = 40  ;;  %v274_v1 = vsel (!%p197_p6), %vm272_vm0, %v252_v0, 0  ;;  %v974_v49 = vld [vmem:[%s3260_s3] sm:$0xff] (!%p197_p6)  ;;  %v1014_v52 = vand.u32 (!%p197_p6), 4294901760, %v975_v50  ;;  %v976_v55 = vld [vmem:[%s3260_s3 + $0x10] sm:$0xff] (!%p197_p6)  ;;  %v977_v56 = vld [vmem:[%s3260_s3 + $0x18] sm:$0xff] (!%p197_p6) }
   0xc   : > { %v2884_v2 = vand.u32 (!%p197_p6), 4294901760, %v274_v1  ;;  %p232_p7 = scmp.lt.s32.totalorder (!%p197_p6), %s2882_s29, 6  ;;  %v1011_v51 = vand.u32 (!%p197_p6), 4294901760, %v974_v49  ;;  %v1017_v59 = vand.u32 (!%p197_p6), 4294901760, %v976_v55  ;;  %v1020_v60 = vand.u32 (!%p197_p6), 4294901760, %v977_v56  ;;  %s224_s14 = sand.u32 (!%p197_p6), 1, %s2777_s18  }
   0xd   : > { %v2953_v54 = vsub.f32 (!%p197_p6), %v975_v50, %v1014_v52  ;;  %vm991_vm2 = vcmask (!%p197_p6), 654336   ;;  %s2625_s17 = smul.u32 (!%p197_p6), 48, %s224_s14 }
   0xe   : > { %2189 = vmatprep.subr.mxu0 (!%p197_p6), %v2884_v2  ;;  %v404_v3 = vsub.f32 (!%p197_p6), %v274_v1, %v2884_v2  ;;  %v2951_v53 = vsub.f32 (!%p197_p6), %v974_v49, %v1011_v51  ;;  %v2969_v63 = vsub.f32 (!%p197_p6), %v976_v55, %v1017_v59  ;;  %v2971_v0 = vsub.f32 (!%p197_p6), %v977_v56, %v1020_v60  ;;  %v978_v1 = vld [vmem:[%s3260_s3 + $0x20] sm:$0xff] (!%p197_p6) }
   0xf   : > { %2190 = vmatpush3.msra.mxu0 (!%p197_p6), %v2884_v2  ;;  %v1155_v58 = vand.u32 (!%p197_p6), 4294901760, %v2953_v54  ;;  %s3193_s20 = scalar_lea.vmem (!%p197_p6), [#allocation2], %s2625_s17  }
  0x10   : > { %v2891_v4 = vand.u32 (!%p197_p6), 4294901760, %v404_v3  ;;  %v1148_v57 = vand.u32 (!%p197_p6), 4294901760, %v2951_v53 }
  0x11   : > { %v1156_v62 = vsub.f32 (!%p197_p6), %v2953_v54, %v1155_v58 }
  0x12   : > { %s233_s30 = scalar_select %p232_p7, %s2882_s29, 6  ;;  %v406_v6 = vsub.f32 %v404_v3, %v2891_v4  ;;  %v1149_v61 = vsub.f32 %v2951_v53, %v1148_v57 }
  0x13   : > { %s1802_s18 = ssub.s32 (%p2874_p4), 7, %s2882_s29  ;;  %s2050_s23 = smul.u32 (%p2874_p4), 48, %s2862_s21 }
  0x14   : > { %s2035_s6 = sshll.u32 %s233_s30, 3  ;;  %v407_v16 = vand.u32 4294901760, %v406_v6  ;;  %v1169_v6 = vand.u32 4294901760, %v2971_v0  ;;  %p1803_p8 = scmp.lt.s32.totalorder (%p2874_p4), %s1802_s18, 6 }
  0x15   : > { %s235_s9 = scalar_lea.vmem %s3257_s0, %s2035_s6  ;;  %s3208_s28 = scalar_lea.vmem (%p2874_p4), %s3262_s5, %s2050_s23  }
  0x16   : > { %v246_v5 = vld [vmem:[%s235_s9] sm:$0xff]  ;;  %v247_v7 = vld [vmem:[%s235_s9 + $0x8] sm:$0xff]  ;;  %v248_v8 = vld [vmem:[%s235_s9 + $0x10] sm:$0xff]  ;;  %2200 = vmatprep.subr.mxu0 %v407_v16 }
  0x17   : > { %v255_v9 = vsel %vm253_vm1, %v246_v5, 0  ;;  %v258_v10 = vsel %vm253_vm1, %v247_v7, 0  ;;  %v261_v11 = vsel %vm253_vm1, %v248_v8, 0  ;;  %v249_v12 = vld [vmem:[%s235_s9 + $0x18] sm:$0xff]  ;;  %v250_v13 = vld [vmem:[%s235_s9 + $0x20] sm:$0xff]  ;;  %v251_v14 = vld [vmem:[%s235_s9 + $0x28] sm:$0xff] }
  0x18   : > { %v2900_v15 = vand.u32 4294901760, %v255_v9  ;;  %v2902_v17 = vand.u32 4294901760, %v258_v10  ;;  %v2904_v18 = vand.u32 4294901760, %v261_v11  ;;  %v264_v19 = vsel %vm253_vm1, %v249_v12, 0 }
  0x19   : > { %v267_v20 = vsel %vm253_vm1, %v250_v13, 0  ;;  %v270_v21 = vsel %vm253_vm1, %v251_v14, 0  ;;  %v2912_v25 = vand.u32 4294901760, %v264_v19  ;;  %v1162_v5 = vand.u32 4294901760, %v2969_v63  ;;  %v980_v14 = vld [vmem:[%s3260_s3 + $0x30] sm:$0xff] }
  0x1a   : > { %v343_v22 = vsub.f32 %v255_v9, %v2900_v15  ;;  %v353_v23 = vsub.f32 %v258_v10, %v2902_v17  ;;  %v363_v24 = vsub.f32 %v261_v11, %v2904_v18  ;;  %v2914_v26 = vand.u32 4294901760, %v267_v20 }
  0x1b   : > { %v2916_v27 = vand.u32 4294901760, %v270_v21  ;;  %v373_v31 = vsub.f32 %v264_v19, %v2912_v25  ;;  %v1023_v7 = vand.u32 4294901760, %v978_v1  ;;  %v1163_v10 = vsub.f32 %v2969_v63, %v1162_v5 }
  0x1c   : > { %v344_v28 = vand.u32 4294901760, %v343_v22  ;;  %v354_v29 = vand.u32 4294901760, %v353_v23  ;;  %v364_v30 = vand.u32 4294901760, %v363_v24  ;;  %v383_v32 = vsub.f32 %v267_v20, %v2914_v26 }
  0x1d   : > { %v393_v33 = vsub.f32 %v270_v21, %v2916_v27  ;;  %v374_v37 = vand.u32 4294901760, %v373_v31  ;;  %v1170_v11 = vsub.f32 %v2971_v0, %v1169_v6  ;;  %v2987_v12 = vsub.f32 %v978_v1, %v1023_v7 }
  0x1e   : > { %v345_v34 = vsub.f32 %v343_v22, %v344_v28  ;;  %v355_v35 = vsub.f32 %v353_v23, %v354_v29  ;;  %v365_v36 = vsub.f32 %v363_v24, %v364_v30  ;;  %v384_v38 = vand.u32 4294901760, %v383_v32 }
  0x1f   : > { %v394_v39 = vand.u32 4294901760, %v393_v33  ;;  %v375_v43 = vsub.f32 %v373_v31, %v374_v37  ;;  %v1176_v20 = vand.u32 4294901760, %v2987_v12 }
  0x20   : > { %v346_v40 = vand.u32 4294901760, %v345_v34  ;;  %v356_v41 = vand.u32 4294901760, %v355_v35  ;;  %v366_v42 = vand.u32 4294901760, %v365_v36  ;;  %v385_v44 = vsub.f32 %v383_v32, %v384_v38 }
  0x21   : > { %v376_v45 = vand.u32 4294901760, %v375_v43  ;;  %v395_v46 = vsub.f32 %v393_v33, %v394_v39  ;;  %v3011_v35 = vpack.c.bf16 %v1014_v52, %v1011_v51 }
  0x22   : > { %2191 = vmatprep.mubr.f32.mxu0 %v346_v40  ;;  %v386_v47 = vand.u32 4294901760, %v385_v44 }
  0x23   : > { %2192 = vmatmul.mubr.f32.vlgmr.msra.gmra.mrb[0].mxu0 %v356_v41  ;;  %v396_v48 = vand.u32 4294901760, %v395_v46 }
  0x24   : > { %2201 = vmatpush3.msra.mxu0 %v407_v16  ;;  %2194 = vmatprep.mubr.f32.mxu0 %v366_v42  ;;  %v1164_v16 = vand.u32 4294901760, %v1163_v10 }
  0x25   : > { %2211 = vmatprep.subr.mxu0 %v404_v3 }
  0x27   : > { %2195 = vmatmul.mubr.f32.gmra.mrb[2].mxu0 %v376_v45  ;;  %v3015_v45 = vpack.c.bf16 %v1020_v60, %v1017_v59  ;;  %v3030_v59 = vpack.c.bf16 %v2953_v54, %v2951_v53  ;;  %v3037_v60 = vpack.c.bf16 %v2971_v0, %v2969_v63 }
  0x28   : > { %2197 = vmatprep.mubr.f32.mxu0 %v386_v47 }
  0x2b   : > { %2198 = vmatmul.mubr.f32.gmra.mrb[4].mxu0 %v396_v48 }
  0x2c   : > { %2202 = vmatprep.mubr.f32.mxu0 %v2900_v15 }
  0x2f   : > { %2203 = vmatmul.mubr.f32.vlgmr.msra.gmra.mrb[0].mxu0 %v2902_v17 }
  0x30   : > { %2212 = vmatpush3.msra.mxu0 %v404_v3  ;;  %2205 = vmatprep.mubr.f32.mxu0 %v2904_v18  ;;  %v1150_v3 = vand.u32 4294901760, %v1149_v61 }
  0x31   : > { %2222 = vmatprep.subr.mxu0 %v2884_v2 }
  0x33   : > { %2206 = vmatmul.mubr.f32.gmra.mrb[2].mxu0 %v2912_v25 }
  0x34   : > { %2208 = vmatprep.mubr.f32.mxu0 %v2914_v26 }
  0x37   : > { %2209 = vmatmul.mubr.f32.gmra.mrb[4].mxu0 %v2916_v27 }
  0x38   : > { %2213 = vmatprep.mubr.f32.mxu0 %v343_v22 }
  0x3b   : > { %2214 = vmatmul.mubr.f32.vlgmr.msra.gmra.mrb[0].mxu0 %v353_v23 }
  0x3c   : > { %2223 = vmatpush3.msra.mxu0 %v2884_v2  ;;  %2216 = vmatprep.mubr.f32.mxu0 %v363_v24 }
  0x3d   : > { %2233 = vmatprep.subr.mxu0 %v2891_v4 }
  0x3f   : > { %2217 = vmatmul.mubr.f32.gmra.mrb[2].mxu0 %v373_v31 }
  0x40   : > { %2219 = vmatprep.mubr.f32.mxu0 %v383_v32 }
  0x43   : > { %2220 = vmatmul.mubr.f32.gmra.mrb[4].mxu0 %v393_v33 }
  0x44   : > { %2224 = vmatprep.mubr.f32.mxu0 %v344_v28  ;;  %v983_v28 = vld [vmem:[%s3260_s3 + $0x48] sm:$0xff] }
  0x45   : > { %v1038_v32 = vand.u32 4294901760, %v983_v28 }
  0x47   : > { %2225 = vmatmul.mubr.f32.vlgmr.msra.gmra.mrb[0].mxu0 %v354_v29  ;;  %v1210_v40 = vsub.f32 %v983_v28, %v1038_v32 }
  0x48   : > { %2234 = vmatpush3.msra.mxu0 %v2891_v4  ;;  %2227 = vmatprep.mubr.f32.mxu0 %v364_v30  ;;  %v1157_v4 = vand.u32 4294901760, %v1156_v62 }
  0x49   : > { %2244 = vmatprep.subr.mxu0 %v2884_v2  ;;  %v1211_v44 = vand.u32 4294901760, %v1210_v40 }
  0x4a   : > { %v2449_v9 = vpack.c.bf16 %v1157_v4, %v1150_v3  ;;  %v2036_v4 = vld [vmem:[%s3259_s2] ss:$0 sm:$0xff] }
  0x4b   : > { %2228 = vmatmul.mubr.f32.gmra.mrb[2].mxu0 %v374_v37  ;;  %v1212_v48 = vsub.f32 %v1210_v40, %v1211_v44 }
  0x4c   : > { %2230 = vmatprep.mubr.f32.mxu0 %v384_v38  ;;  %2450 = vmatprep.subr.bf16.mxu1 %v2449_v9 }
  0x4d   : > { %2452 = vmatpush3.bf16.msra.mxu1 %v2449_v9  ;;  %v1213_v50 = vand.u32 4294901760, %v1212_v48 }
  0x4f   : > { %2231 = vmatmul.mubr.f32.gmra.mrb[4].mxu0 %v394_v39 }
  0x50   : > { %2235 = vmatprep.mubr.f32.mxu0 %v2900_v15 }
  0x53   : > { %2236 = vmatmul.mubr.f32.vlgmr.msra.gmra.mrb[0].mxu0 %v2902_v17 }
  0x54   : > { %2245 = vmatpush3.msra.mxu0 %v2884_v2  ;;  %2238 = vmatprep.mubr.f32.mxu0 %v2904_v18  ;;  %v979_v2 = vld [vmem:[%s3260_s3 + $0x28] sm:$0xff] }
  0x55   : > { %v1026_v8 = vand.u32 4294901760, %v979_v2  ;;  %2430 = vmatprep.subr.bf16.mxu0 %v3011_v35 }
  0x57   : > { %2239 = vmatmul.mubr.f32.gmra.mrb[2].mxu0 %v2912_v25  ;;  %v2989_v13 = vsub.f32 %v979_v2, %v1026_v8  ;;  %v3019_v51 = vpack.c.bf16 %v1026_v8, %v1023_v7 }
  0x58   : > { %2241 = vmatprep.mubr.f32.mxu0 %v2914_v26 }
  0x59   : > { %v1183_v21 = vand.u32 4294901760, %v2989_v13  ;;  %v3043_v61 = vpack.c.bf16 %v2989_v13, %v2987_v12 }
  0x5b   : > { %2242 = vmatmul.mubr.f32.gmra.mrb[4].mxu0 %v2916_v27  ;;  %v2517_v53 = vpack.c.bf16 %v1183_v21, %v1176_v20 }
  0x5c   : > { %2246 = vmatprep.mubr.f32.mxu0 %v2900_v15  ;;  %v981_v15 = vld [vmem:[%s3260_s3 + $0x38] sm:$0xff] }
  0x5d   : > { %v1032_v19 = vand.u32 4294901760, %v981_v15 }
  0x5f   : > { %2247 = vmatmul.mubr.f32.vlgmr.msra.gmra.mrb[0].mxu0 %v2902_v17  ;;  %v1171_v17 = vand.u32 4294901760, %v1170_v11  ;;  %v1196_v24 = vsub.f32 %v981_v15, %v1032_v19 }
  0x60   : > { %2249 = vmatprep.mubr.f32.mxu0 %v2904_v18  ;;  %v1029_v18 = vand.u32 4294901760, %v980_v14  ;;  %2432 = vmatpush3.bf16.msra.mxu0 %v3011_v35 }
  0x61   : > { %v2453_v22 = vpack.c.bf16 %v1171_v17, %v1164_v16  ;;  %v1197_v30 = vand.u32 4294901760, %v1196_v24  ;;  %2434 = vmatprep.subr.bf16.mxu0 %v3015_v45 }
  0x62   : > { %v1189_v23 = vsub.f32 %v980_v14, %v1029_v18  ;;  %v3021_v52 = vpack.c.bf16 %v1032_v19, %v1029_v18 }
  0x63   : > { %2250 = vmatmul.mubr.f32.gmra.mrb[2].mxu0 %v2912_v25  ;;  %v1177_v25 = vsub.f32 %v2987_v12, %v1176_v20  ;;  %2454 = vmatprep.subr.bf16.mxu1 %v2453_v22  ;;  %v1198_v37 = vsub.f32 %v1196_v24, %v1197_v30 }
  0x64   : > { %2252 = vmatprep.mubr.f32.mxu0 %v2914_v26  ;;  %v1184_v26 = vsub.f32 %v2989_v13, %v1183_v21  ;;  %v1190_v29 = vand.u32 4294901760, %v1189_v23  ;;  %2456 = vmatpush3.bf16.msra.mxu1 %v2453_v22  ;;  %v3045_v62 = vpack.c.bf16 %v1196_v24, %v1189_v23  ;;  %v2037_v13 = vld [vmem:[%s3261_s4] ss:$0 sm:$0xff] }
  0x65   : > { %v1178_v33 = vand.u32 4294901760, %v1177_v25  ;;  %v1199_v42 = vand.u32 4294901760, %v1198_v37  ;;  %2436 = vmatpush3.bf16.msra.mxu0 %v3015_v45 }
  0x66   : > { %v1185_v34 = vand.u32 4294901760, %v1184_v26  ;;  %v1191_v36 = vsub.f32 %v1189_v23, %v1190_v29  ;;  %2438 = vmatprep.subr.bf16.mxu0 %v3019_v51  ;;  %v3049_v2 = vpack.c.bf16 %v1197_v30, %v1190_v29 }
  0x67   : > { %2253 = vmatmul.mubr.f32.gmra.mrb[4].mxu0 %v2916_v27  ;;  %v982_v27 = vld [vmem:[%s3260_s3 + $0x40] sm:$0xff] }
  0x68   : > { %v1035_v31 = vand.u32 4294901760, %v982_v27  ;;  %v2457_v39 = vpack.c.bf16 %v1185_v34, %v1178_v33  ;;  %v1192_v41 = vand.u32 4294901760, %v1191_v36 }
  0x69   : > { %2440 = vmatpush3.bf16.msra.mxu0 %v3019_v51 }
  0x6a   : > { %v1203_v38 = vsub.f32 %v982_v27, %v1035_v31  ;;  %2458 = vmatprep.subr.bf16.mxu1 %v2457_v39  ;;  %v2461_v46 = vpack.c.bf16 %v1199_v42, %v1192_v41  ;;  %v3025_v56 = vpack.c.bf16 %v1038_v32, %v1035_v31  ;;  %2442 = vmatprep.subr.bf16.mxu0 %v3021_v52 }
  0x6b   : > { %2460 = vmatpush3.bf16.msra.mxu1 %v2457_v39 }
  0x6c   : > { %v1204_v43 = vand.u32 4294901760, %v1203_v38  ;;  %2462 = vmatprep.subr.bf16.mxu1 %v2461_v46  ;;  %v3047_v1 = vpack.c.bf16 %v1210_v40, %v1203_v38 }
  0x6d   : > { %2444 = vmatpush3.bf16.msra.mxu0 %v3021_v52 }
  0x6e   : > { %v1205_v47 = vsub.f32 %v1203_v38, %v1204_v43  ;;  %2446 = vmatprep.subr.bf16.mxu0 %v3025_v56  ;;  %v3051_v3 = vpack.c.bf16 %v1211_v44, %v1204_v43 }
  0x6f   : > { %2464 = vmatpush3.bf16.msra.mxu1 %v2461_v46 }
  0x70   : > { %v1206_v49 = vand.u32 4294901760, %v1205_v47 }
  0x71   : > { %2448 = vmatpush3.bf16.msra.mxu0 %v3025_v56 }
  0x72   : > { %v2465_v55 = vpack.c.bf16 %v1213_v50, %v1206_v49  ;;  %2530 = vmatprep.subr.bf16.mxu0 %v3011_v35 }
  0x74   : > { %2466 = vmatprep.subr.bf16.mxu1 %v2465_v55 }
  0x75   : > { %2468 = vmatpush3.bf16.msra.mxu1 %v2465_v55 }
  0x76   : > { %2470 = vmatprep.subr.bf16.mxu1 %v3030_v59 }
 0x132   : > { %v2248_v7 = vpop.f32.mrb[0].mxu0 }
 0x133   : > { %v945_v8 = vsub.f32 %v2248_v7, %v2036_v4  ;;  %v903_v9 = vpop.f32.mrb[1].mxu0 }
 0x134   : > { %v944_v10 = vsub.f32 %v903_v9, %v2036_v4 }
 0x135   : > { %v951_v11 = vmul.f32 -10.0, %v945_v8 }
 0x136   : > { %v950_v14 = vmul.f32 -10.0, %v944_v10  ;;  %v2251_v15 = vpop.f32.mrb[2].mxu0 }
 0x137   : > { %v957_v16 = vmul.f32 %v951_v11, %v945_v8  ;;  %v947_v17 = vsub.f32 %v2251_v15, %v2036_v4  ;;  %v915_v18 = vpop.f32.mrb[3].mxu0 }
 0x138   : > { %v956_v19 = vmul.f32 %v950_v14, %v944_v10  ;;  %v946_v22 = vsub.f32 %v915_v18, %v2036_v4 }
 0x139   : > { %v964_v23 = vmul.f32 1.442695, %v957_v16  ;;  %v953_v24 = vmul.f32 -10.0, %v947_v17 }
 0x13a   : > { %v962_v25 = vmul.f32 1.442695, %v956_v19  ;;  %v952_v26 = vmul.f32 -10.0, %v946_v22  ;;  %v2254_v27 = vpop.f32.mrb[4].mxu0 }
 0x13b   : > { %2715 = vpow2.f32 %v964_v23  ;;  %v959_v28 = vmul.f32 %v953_v24, %v947_v17  ;;  %v949_v29 = vsub.f32 %v2254_v27, %v2036_v4  ;;  %v927_v30 = vpop.f32.mrb[5].mxu0 }
 0x13c   : > { %2717 = vpow2.f32 %v962_v25  ;;  %v958_v31 = vmul.f32 %v952_v26, %v946_v22  ;;  %v948_v32 = vsub.f32 %v927_v30, %v2036_v4 }
 0x13d   : > { %v968_v33 = vmul.f32 1.442695, %v959_v28  ;;  %v955_v34 = vmul.f32 -10.0, %v949_v29 }
 0x13e   : > { %v966_v36 = vmul.f32 1.442695, %v958_v31  ;;  %v954_v37 = vmul.f32 -10.0, %v948_v32 }
 0x13f   : > { %2719 = vpow2.f32 %v968_v33  ;;  %v961_v38 = vmul.f32 %v955_v34, %v949_v29 }
 0x140   : > { %2721 = vpow2.f32 %v966_v36  ;;  %v960_v39 = vmul.f32 %v954_v37, %v948_v32 }
 0x141   : > { %v972_v40 = vmul.f32 1.442695, %v961_v38 }
 0x142   : > { %v970_v41 = vmul.f32 1.442695, %v960_v39 }
 0x143   : > { %2723 = vpow2.f32 %v972_v40 }
 0x144   : > { %2725 = vpow2.f32 %v970_v41 }
 0x145   : > { %v2716_v42 = vpop.eup %2715 }
 0x146   : > { %v2718_v43 = vpop.eup %2717  ;;  %v996_v44 = vsel %vm991_vm2, %v2716_v42, 0 }
 0x147   : > { %v993_v46 = vsel %vm991_vm2, %v2718_v43, 0  ;;  %v3058_v47 = vand.u32 4294901760, %v996_v44 }
 0x148   : > { %v3060_v48 = vand.u32 4294901760, %v993_v46 }
 0x149   : > { %v2720_v49 = vpop.eup %2719  ;;  %v3063_v50 = vsub.f32 %v996_v44, %v3058_v47 }
 0x14a   : > { %v2722_v55 = vpop.eup %2721  ;;  %2304 = vmatprep.mubr.f32.mxu1 %v3060_v48  ;;  %v1002_v4 = vsel %vm991_vm2, %v2720_v49, 0  ;;  %v3068_v7 = vsub.f32 %v993_v46, %v3060_v48 }
 0x14b   : > { %v1097_v8 = vand.u32 4294901760, %v3063_v50  ;;  %2305 = vmatmul.mubr.f32.vlgmr.msra.gmra.mrb[0].mxu1 %v3058_v47  ;;  %v999_v9 = vsel %vm991_vm2, %v2722_v55, 0  ;;  %v3073_v10 = vand.u32 4294901760, %v1002_v4 }
 0x14c   : > { %2472 = vmatpush3.bf16.msra.mxu1 %v3030_v59  ;;  %v3076_v11 = vand.u32 4294901760, %v999_v9  ;;  %v1087_v14 = vand.u32 4294901760, %v3068_v7 }
 0x14d   : > { %v2724_v15 = vpop.eup %2723  ;;  %2474 = vmatprep.subr.bf16.mxu1 %v3037_v60  ;;  %v1098_v16 = vsub.f32 %v3063_v50, %v1097_v8  ;;  %v3084_v17 = vsub.f32 %v1002_v4, %v3073_v10 }
 0x14e   : > { %v2726_v18 = vpop.eup %2725  ;;  %2307 = vmatprep.mubr.f32.mxu1 %v3076_v11  ;;  %v1088_v59 = vsub.f32 %v3068_v7, %v1087_v14  ;;  %v1008_v19 = vsel %vm991_vm2, %v2724_v15, 0  ;;  %v3092_v22 = vsub.f32 %v999_v9, %v3076_v11 }
 0x14f   : > { %2308 = vmatmul.mubr.f32.gmra.mrb[2].mxu1 %v3073_v10  ;;  %v1005_v23 = vsel %vm991_vm2, %v2726_v18, 0  ;;  %v3096_v24 = vand.u32 4294901760, %v1008_v19  ;;  %v1117_v25 = vand.u32 4294901760, %v3084_v17  ;;  %v1099_v29 = vand.u32 4294901760, %v1098_v16 }
 0x150   : > { %2476 = vmatpush3.bf16.msra.mxu1 %v3037_v60  ;;  %v1089_v26 = vand.u32 4294901760, %v1088_v59  ;;  %v3100_v27 = vand.u32 4294901760, %v1005_v23  ;;  %v1107_v28 = vand.u32 4294901760, %v3092_v22 }
 0x151   : > { %2478 = vmatprep.subr.bf16.mxu1 %v3043_v61  ;;  %v1118_v30 = vsub.f32 %v3084_v17, %v1117_v25  ;;  %v3108_v31 = vsub.f32 %v1008_v19, %v3096_v24 }
 0x152   : > { %2275 = vmatprep.mubr.f32.mxu0 %v1089_v26  ;;  %2310 = vmatprep.mubr.f32.mxu1 %v3100_v27  ;;  %v1108_v60 = vsub.f32 %v3092_v22, %v1107_v28  ;;  %v1126_v32 = vsub.f32 %v1005_v23, %v3100_v27 }
 0x153   : > { %2276 = vmatmul.mubr.f32.vlgmr.msra.gmra.mrb[6].mxu0 %v1099_v29  ;;  %2311 = vmatmul.mubr.f32.gmra.mrb[4].mxu1 %v3096_v24  ;;  %v1137_v33 = vand.u32 4294901760, %v3108_v31  ;;  %v1119_v37 = vand.u32 4294901760, %v1118_v30 }
 0x154   : > { %2480 = vmatpush3.bf16.msra.mxu1 %v3043_v61  ;;  %2532 = vmatpush3.bf16.msra.mxu0 %v3011_v35  ;;  %v1109_v34 = vand.u32 4294901760, %v1108_v60  ;;  %v1127_v36 = vand.u32 4294901760, %v1126_v32 }
 0x155   : > { %2333 = vmatprep.mubr.f32.mxu1 %v3068_v7  ;;  %2482 = vmatprep.subr.bf16.mxu1 %v3045_v62  ;;  %v1138_v38 = vsub.f32 %v3108_v31, %v1137_v33 }
 0x156   : > { %2278 = vmatprep.mubr.f32.mxu0 %v1109_v34  ;;  %2534 = vmatprep.subr.bf16.mxu0 %v3015_v45  ;;  %v1128_v39 = vsub.f32 %v1126_v32, %v1127_v36 }
 0x157   : > { %2279 = vmatmul.mubr.f32.gmra.mrb[8].mxu0 %v1119_v37  ;;  %v1139_v40 = vand.u32 4294901760, %v1138_v38 }
 0x158   : > { %2484 = vmatpush3.bf16.msra.mxu1 %v3045_v62  ;;  %2536 = vmatpush3.bf16.msra.mxu0 %v3015_v45  ;;  %v1129_v61 = vand.u32 4294901760, %v1128_v39  ;;  %v2509_v62 = vpack.c.bf16 %v1155_v58, %v1148_v57 }
 0x159   : > { %2486 = vmatprep.subr.bf16.mxu1 %v3047_v1  ;;  %2538 = vmatprep.subr.bf16.mxu0 %v3019_v51 }
 0x15a   : > { %2281 = vmatprep.mubr.f32.mxu0 %v1129_v61 }
 0x15b   : > { %2282 = vmatmul.mubr.f32.gmra.mrb[10].mxu0 %v1139_v40 }
 0x15c   : > { %2488 = vmatpush3.bf16.msra.mxu1 %v3047_v1  ;;  %2540 = vmatpush3.bf16.msra.mxu0 %v3019_v51  ;;  %v2513_v1 = vpack.c.bf16 %v1169_v6, %v1162_v5 }
 0x15d   : > { %2420 = vmatprep.mubr.f32.mxu0 %v3060_v48  ;;  %2490 = vmatprep.subr.bf16.mxu1 %v3011_v35 }
 0x15e   : > { %2542 = vmatprep.subr.bf16.mxu0 %v3021_v52 }
 0x15f   : > { %2334 = vmatmul.mubr.f32.vlgmr.msra.gmra.mrb[0].mxu1 %v3063_v50 }
 0x160   : > { %2336 = vmatprep.mubr.f32.mxu1 %v3092_v22  ;;  %2492 = vmatpush3.bf16.msra.mxu1 %v3011_v35 }
 0x161   : > { %2544 = vmatpush3.bf16.msra.mxu0 %v3021_v52  ;;  %2494 = vmatprep.subr.bf16.mxu1 %v3015_v45 }
 0x162   : > { %2546 = vmatprep.subr.bf16.mxu0 %v3025_v56 }
 0x163   : > { %2337 = vmatmul.mubr.f32.gmra.mrb[2].mxu1 %v3084_v17 }
 0x164   : > { %2339 = vmatprep.mubr.f32.mxu1 %v1126_v32  ;;  %2496 = vmatpush3.bf16.msra.mxu1 %v3015_v45 }
 0x165   : > { %2548 = vmatpush3.bf16.msra.mxu0 %v3025_v56  ;;  %2498 = vmatprep.subr.bf16.mxu1 %v3019_v51 }
 0x167   : > { %2340 = vmatmul.mubr.f32.gmra.mrb[4].mxu1 %v3108_v31 }
 0x168   : > { %2421 = vmatmul.mubr.f32.vlgmr.msra.gmra.mrb[12].mxu0 %v3058_v47  ;;  %2500 = vmatpush3.bf16.msra.mxu1 %v3019_v51 }
 0x169   : > { %2362 = vmatprep.mubr.f32.mxu1 %v1087_v14  ;;  %2502 = vmatprep.subr.bf16.mxu1 %v3021_v52 }
 0x16c   : > { %2504 = vmatpush3.bf16.msra.mxu1 %v3021_v52 }
 0x16d   : > { %2506 = vmatprep.subr.bf16.mxu1 %v3025_v56 }
 0x170   : > { %2508 = vmatpush3.bf16.msra.mxu1 %v3025_v56 }
 0x171   : > { %2510 = vmatprep.subr.bf16.mxu1 %v2509_v62 }
 0x173   : > { %2363 = vmatmul.mubr.f32.vlgmr.msra.gmra.mrb[0].mxu1 %v1097_v8 }
 0x174   : > { %2365 = vmatprep.mubr.f32.mxu1 %v1107_v28  ;;  %2512 = vmatpush3.bf16.msra.mxu1 %v2509_v62 }
 0x175   : > { %2514 = vmatprep.subr.bf16.mxu1 %v2513_v1 }
 0x177   : > { %2366 = vmatmul.mubr.f32.gmra.mrb[2].mxu1 %v1117_v25 }
 0x178   : > { %2368 = vmatprep.mubr.f32.mxu1 %v1127_v36  ;;  %2516 = vmatpush3.bf16.msra.mxu1 %v2513_v1 }
 0x179   : > { %2518 = vmatprep.subr.bf16.mxu1 %v2517_v53 }
 0x17b   : > { %2369 = vmatmul.mubr.f32.gmra.mrb[4].mxu1 %v1137_v33 }
 0x17c   : > { %2520 = vmatpush3.bf16.msra.mxu1 %v2517_v53  ;;  %2391 = vmatprep.mubr.f32.mxu1 %v3060_v48 }
 0x17d   : > { %2522 = vmatprep.subr.bf16.mxu1 %v3049_v2 }
 0x180   : > { %2524 = vmatpush3.bf16.msra.mxu1 %v3049_v2 }
 0x181   : > { %2526 = vmatprep.subr.bf16.mxu1 %v3051_v3 }
 0x184   : > { %2528 = vmatpush3.bf16.msra.mxu1 %v3051_v3 }
 0x185   : > { %2549 = vmatprep.subr.bf16.mxu1 %v3011_v35 }
 0x187   : > { %2392 = vmatmul.mubr.f32.vlgmr.msra.gmra.mrb[0].mxu1 %v3058_v47 }
 0x188   : > { %2394 = vmatprep.mubr.f32.mxu1 %v3076_v11  ;;  %2554 = vmatpush3.bf16.msra.mxu1 %v3011_v35 }
 0x189   : > { %2550 = vmatprep.subr.bf16.mxu1 %v3015_v45 }
 0x18b   : > { %2395 = vmatmul.mubr.f32.gmra.mrb[2].mxu1 %v3073_v10 }
 0x18c   : > { %2397 = vmatprep.mubr.f32.mxu1 %v3100_v27  ;;  %2555 = vmatpush3.bf16.msra.mxu1 %v3015_v45 }
 0x18d   : > { %2551 = vmatprep.subr.bf16.mxu1 %v3019_v51 }
 0x18f   : > { %2398 = vmatmul.mubr.f32.gmra.mrb[4].mxu1 %v3096_v24 }
 0x190   : > { %2556 = vmatpush3.bf16.msra.mxu1 %v3019_v51  ;;  %2423 = vmatprep.mubr.f32.mxu1 %v3076_v11 }
 0x191   : > { %2552 = vmatprep.subr.bf16.mxu1 %v3021_v52 }
 0x194   : > { %2557 = vmatpush3.bf16.msra.mxu1 %v3021_v52 }
 0x195   : > { %2553 = vmatprep.subr.bf16.mxu1 %v3025_v56 }
 0x198   : > { %2558 = vmatpush3.bf16.msra.mxu1 %v3025_v56 }
 0x19b   : > { %2424 = vmatmul.mubr.f32.vlgmr.msra.gmra.mrb[2].mxu1 %v3073_v10 }
 0x19c   : > { %2426 = vmatprep.mubr.f32.mxu1 %v3100_v27 }
 0x19f   : > { %2427 = vmatmul.mubr.f32.gmra.mrb[4].mxu1 %v3096_v24 }
 0x226   : > { %v2277_v54 = vpop.f32.mrb[6].mxu0 }
 0x227   : > { %v1091_v57 = vpop.f32.mrb[7].mxu0  ;;  %v1102_v20 = vadd.f32 %v2277_v54, %v2037_v13 }
 0x228   : > { %v1092_v21 = vadd.f32 %v2037_v13, %v1091_v57 }
 0x22a   : > { %v2280_v58 = vpop.f32.mrb[8].mxu0 }
 0x22b   : > { %v1111_v63 = vpop.f32.mrb[9].mxu0  ;;  %v1122_v3 = vadd.f32 %v2280_v58, %v2037_v13 }
 0x22c   : > { %v1112_v41 = vadd.f32 %v2037_v13, %v1111_v63 }
 0x22e   : > { %v2283_v0 = vpop.f32.mrb[10].mxu0 }
 0x22f   : > { %v1131_v5 = vpop.f32.mrb[11].mxu0  ;;  %v1142_v47 = vadd.f32 %v2283_v0, %v2037_v13 }
 0x230   : > { %v1132_v48 = vadd.f32 %v2037_v13, %v1131_v5 }
 0x23b   : > { %v2422_v6 = vpop.f32.mrb[12].mxu0 }
 0x23c   : > { %v1754_v12 = vpop.f32.mrb[13].mxu0 }
 0x25a   : > { %v2393_v35 = vpop.f32.mrb[0].mxu1 }
 0x25b   : > { %v2560_v45 = vadd.f32 %v2393_v35, %v1102_v20  ;;  %v1643_v51 = vpop.f32.mrb[1].mxu1 }
 0x25c   : > { %v2563_v52 = vadd.f32 %v1643_v51, %v1092_v21 }
 0x25d   : > { %v2561_v56 = vadd.f32 %v2560_v45, %v2422_v6 }
 0x25e   : > { %v2564_v2 = vadd.f32 %v2563_v52, %v1754_v12 }
 0x25f   : > { %1789 = vst [vmem:[%s3193_s20 + $0x8] sm:$0xff] %v2561_v56 }
 0x260   : > { %1788 = vst [vmem:[%s3193_s20] sm:$0xff] %v2564_v2 }
 0x26e   : > { %v2425_v42 = vpop.f32.mrb[2].mxu1 }
 0x26f   : > { %v2566_v43 = vadd.f32 %v2425_v42, %v1122_v3  ;;  %v1766_v44 = vpop.f32.mrb[3].mxu1 }
 0x270   : > { %v2568_v46 = vadd.f32 %v1766_v44, %v1112_v41  ;;  %1800 = sbr.rel (!%p2874_p4) target bundleno = 692 (0x2b4), region = 44 }
 0x271   : > { %1791 = vst [vmem:[%s3193_s20 + $0x18] sm:$0xff] %v2566_v43 }
 0x272   : > { %1790 = vst [vmem:[%s3193_s20 + $0x10] sm:$0xff] %v2568_v46  ;;  %v2428_v49 = vpop.f32.mrb[4].mxu1 }
 0x273   : > { %v2570_v50 = vadd.f32 %v2428_v49, %v1142_v47  ;;  %v1778_v55 = vpop.f32.mrb[5].mxu1 }
 0x274   : > { %v2572_v4 = vadd.f32 %v1778_v55, %v1132_v48 }
 0x275   : > { %1793 = vst [vmem:[%s3193_s20 + $0x28] sm:$0xff] %v2570_v50 }
 0x276   : > { %1792 = vst [vmem:[%s3193_s20 + $0x20] sm:$0xff] %v2572_v4 }
 0x277   : > { %s3271_s18 = smov (!%p1803_p8, %s1802_s18), 6 }
 0x278   : > { %s2038_s30 = sshll.u32 %s3271_s18, 7 }
 0x279   : > { %p2041_p9 = scmp.eq.s32.totalorder %s2038_s30, 0 }
 0x27a   : > { %2727 = sdivrem.u32 (!%p2041_p9), %s3271_s18, 6 }
 0x27b   : > { %1811 = sbr.rel (%p2041_p9) target bundleno = 692 (0x2b4), region = 48 }
 0x283   : > { %s3214_s26 = spop.drf %2727 }
 0x284   : > { %p2042_p10 = scmp.le.s32.totalorder %s3214_s26, 0 }
 0x285   : > { %s3264_s21 = smov (!%p2042_p10), %s3208_s28  ;;  %s3265_s29 = smov (!%p2042_p10), %s3193_s20 }
 0x286   : > { %1987 = sbr.rel (%p2042_p10) target bundleno = 663 (0x297), region = 124  ;;  %s3223_s6 = smov (!%p2042_p10), 0  }
 0x287   : > { %s3225_s7 = smov (!%p2042_p10), 0  }
 0x28d LB: >> { %v1885_v7 = vld [vmem:[%s2793_s29] sm:$0xff]  ;;  %v1887_v8 = vld [vmem:[%s2793_s29 + $0x8] sm:$0xff]  ;;  %v1889_v9 = vld [vmem:[%s2793_s29 + $0x10] sm:$0xff]  ;;  %s1897_s8 = sadd.s32 1, %s2797_s6  ;;  %s1879_s7 = sadd.s32 1, %s2801_s7   ;;  %s2801_s7 = sphi %s3225_s7, %s1879_s7   ;;  %s2797_s6 = sphi %s3223_s6, %s3266_s6   ;;  %s2793_s29 = sphi %s3265_s29, %s1902_s29   ;;  %s2789_s21 = sphi %s3264_s21, %s1903_s21  }
 0x28e   : >> { %1886 = vst [vmem:[%s2789_s21] sm:$0xff] %v1885_v7  ;;  %1888 = vst [vmem:[%s2789_s21 + $0x8] sm:$0xff] %v1887_v8  ;;  %v1891_v10 = vld [vmem:[%s2793_s29 + $0x18] sm:$0xff]  ;;  %v1893_v11 = vld [vmem:[%s2793_s29 + $0x20] sm:$0xff]  ;;  %p1898_p11 = scmp.ge.s32.totalorder %s1897_s8, %s3214_s26  ;;  %p1878_p12 = scmp.ge.s32.totalorder %s1879_s7, %s3214_s26 }
 0x28f   : >> { %1890 = vst [vmem:[%s2789_s21 + $0x10] sm:$0xff] %v1889_v9  ;;  %v1895_v14 = vld [vmem:[%s2793_s29 + $0x28] sm:$0xff]  ;;  %1892 = vst [vmem:[%s2789_s21 + $0x18] sm:$0xff] %v1891_v10 }
 0x290   : >> { %1894 = vst [vmem:[%s2789_s21 + $0x20] sm:$0xff] %v1893_v11  ;;  %1896 = vst [vmem:[%s2789_s21 + $0x28] sm:$0xff] %v1895_v14  ;;  %s3273_s8 = smov (%p1898_p11, %s1897_s8), 0  ;;  %1881 = sbr.rel (!%p1878_p12) target bundleno = 653 (0x28d), region = 130 }
 0x291   : >> { %s1900_s9 = smul.u32 48, %s3273_s8  ;;  %s3266_s6 = smov %s3273_s8 }
 0x293   : >> { %s1902_s29 = scalar_lea.vmem %s3193_s20, %s1900_s9 [#allocation2]   ;;  %s1903_s21 = scalar_lea.vmem %s3208_s28, %s1900_s9  }
 0x297 PF: > { %2729 = sdivrem.u32 %s3271_s18, 6 }
 0x298   : > { %s2043_s10 = smul.u32 48, %s3214_s26 }
 0x29a   : > { %s1908_s11 = scalar_lea.vmem %s3193_s20, %s2043_s10 [#allocation2]   ;;  %s1910_s12 = scalar_lea.vmem %s3208_s28, %s2043_s10  }
 0x2a0   : > { %s2730_s13 = spop.drf %2729 }
 0x2a1   : > { %p2045_p13 = scmp.le.s32.totalorder %s2730_s13, 0 }
 0x2a2   : > { %s2803_s14 = smov (!%p2045_p13), %s1910_s12   ;;  %s2807_s15 = smov (!%p2045_p13), %s1908_s11  }
 0x2a3   : > { %2001 = sbr.rel (%p2045_p13) target bundleno = 692 (0x2b4), region = 135  ;;  %s2811_s16 = smov (!%p2045_p13), 0  }
 0x2a4   : > { %s2815_s17 = smov (!%p2045_p13), 0  }
 0x2aa LB: >> { %v1920_v15 = vld [vmem:[%s2809_s15] sm:$0xff]  ;;  %s1922_s23 = sadd.s32 1, %s2813_s16  ;;  %s1914_s17 = sadd.s32 1, %s2817_s17   ;;  %s2817_s17 = sphi %s2815_s17, %s1914_s17   ;;  %s2813_s16 = sphi %s2811_s16, %s2812_s16   ;;  %s2809_s15 = sphi %s2807_s15, %s1927_s15   ;;  %s2805_s14 = sphi %s2803_s14, %s1928_s14  }
 0x2ab   : >> { %1921 = vst [vmem:[%s2805_s14] sm:$0xff] %v1920_v15  ;;  %p1923_p0 = scmp.ge.s32.totalorder %s1922_s23, %s2730_s13  ;;  %p1913_p1 = scmp.ge.s32.totalorder %s1914_s17, %s2730_s13 }
 0x2ad   : >> { %s3275_s23 = smov (%p1923_p0, %s1922_s23), 0  ;;  %1916 = sbr.rel (!%p1913_p1) target bundleno = 682 (0x2aa), region = 141 }
 0x2ae   : >> { %s2046_s20 = sshll.u32 %s3275_s23, 3  ;;  %s2812_s16 = smov %s3275_s23  }
 0x2af   : >> { %s1927_s15 = scalar_lea.vmem %s1908_s11, %s2046_s20 [#allocation2]   ;;  %s1928_s14 = scalar_lea.vmem %s1910_s12, %s2046_s20  }
 0x2b4 PF: > { %p12_p2 = scmp.ge.s32.totalorder %s2864_s22, 4   ;;  %s3267_s18 = smov %s2781_s19 }
 0x2b5   : > { %s3268_s19 = smov %s2872_s25  ;;  %s3269_s20 = smov %s2864_s22 }
 0x2b6   :  { %14 = sbr.rel (!%p12_p2) target bundleno = 2 (0x2), region = 152 }

</bundles_post_ra>
